<compile_context>
chip_gen: v7x
topology: tpu7x:2x2x1
jax: 0.10.0
libtpu: 0.0.40
codegen_flags: <defaults>
</compile_context>

<pallas_src>
import functools

import jax
import jax.numpy as jnp
from jax.experimental import pallas as pl
from jax.experimental.pallas import tpu as pltpu


def _prenorm_attn_kernel(x_ref, x2_ref, gb_ref, wq_ref, wkv_ref, wo_ref, o_ref,
                         *, eps, d_actual, pad, b_blk, n_tok):
    """One batch block: shared LayerNorm on x and x2, then cross-attention.

    Token refs are flattened (b_blk * n_tok, DP) bf16 slabs with a lane-dense
    padded feature dim DP (multiple of 128); only the first `d_actual`
    features are real (rest are zero).  The softmax 1/sqrt(d) scale is
    pre-folded into wq.
    """
    rows, dp = x_ref.shape
    inv_d = 1.0 / d_actual

    gb = gb_ref[...]                       # (2, DP) f32, zero in padded lanes
    gamma = gb[0:1, :]
    beta = gb[1:2, :]

    if pad == 0:
        valid = None                       # D is already a multiple of 128
    else:
        lane = jax.lax.broadcasted_iota(jnp.int32, (rows, dp), 1)
        valid = lane < d_actual            # mask of real features

    def layer_norm(v):                     # v: (rows, DP) f32
        # Padded lanes are zero, so plain sums give correct statistics as long
        # as we divide by the *real* feature count.
        mu = jnp.sum(v, axis=-1, keepdims=True) * inv_d
        c = v - mu if valid is None else jnp.where(valid, v - mu, 0.0)
        var = jnp.sum(c * c, axis=-1, keepdims=True) * inv_d
        return c * jax.lax.rsqrt(var + eps) * gamma + beta

    # bf16 token DMA -> f32 LayerNorm math -> bf16 MXU feeds (f32 accumulation)
    xn = layer_norm(x_ref[...].astype(jnp.float32)).astype(jnp.bfloat16)
    x2n = layer_norm(x2_ref[...].astype(jnp.float32)).astype(jnp.bfloat16)

    q = jnp.dot(xn, wq_ref[...], preferred_element_type=jnp.float32)
    kv = jnp.dot(x2n, wkv_ref[...], preferred_element_type=jnp.float32)
    k = kv[:, :dp]                         # static, lane-tile-aligned slices
    v = kv[:, dp:]

    # Per-batch attention: layout-preserving reshapes (n_tok multiple of 8).
    q3 = q.reshape(b_blk, n_tok, dp)
    k3 = k.reshape(b_blk, n_tok, dp)
    v3 = v.reshape(b_blk, n_tok, dp).astype(jnp.bfloat16)

    # Contract over the feature dim of q and k: no explicit k transpose.
    s = jax.lax.dot_general(q3, k3, (((2,), (2,)), ((0,), (0,))),
                            preferred_element_type=jnp.float32)
    s = s - jnp.max(s, axis=-1, keepdims=True)
    p = jnp.exp(s)
    p = p * pl.reciprocal(jnp.sum(p, axis=-1, keepdims=True), approx=True)

    ctx = jax.lax.dot_general(p.astype(jnp.bfloat16), v3,
                              (((2,), (1,)), ((0,), (0,))),
                              preferred_element_type=jnp.float32)
    out = jnp.dot(ctx.reshape(rows, dp).astype(jnp.bfloat16), wo_ref[...],
                  preferred_element_type=jnp.float32)
    o_ref[...] = out.astype(o_ref.dtype)   # single lane-dense store


def prepare_prenorm_attn_params(gamma, beta, wq, wk, wv, wo, *, dim):
    """One-time (init-time) padding / fusion / bf16 conversion of parameters."""
    dp = pl.cdiv(dim, 128) * 128           # lane-dense padded feature dim
    pad = dp - dim
    f32, bf16 = jnp.float32, jnp.bfloat16

    pad_vec = lambda v: jnp.pad(v.astype(f32), (0, pad))
    pad_mat = lambda w: jnp.pad(w.astype(f32), ((0, pad), (0, pad)))

    gb = jnp.stack([pad_vec(gamma), pad_vec(beta)], axis=0)        # (2, DP)
    scale = 1.0 / float(dim) ** 0.5
    wq_p = (pad_mat(wq) * scale).astype(bf16)                      # fold 1/sqrt(d)
    wkv_p = jnp.concatenate([pad_mat(wk), pad_mat(wv)], axis=1).astype(bf16)
    wo_p = pad_mat(wo).astype(bf16)
    return {"gb": gb, "wq": wq_p, "wkv": wkv_p, "wo": wo_p,
            "dim": dim, "dp": dp, "pad": pad}


def _pick_batch_block(batch, n_tok, max_rows):
    """Largest batch block whose flattened row count fits the target M."""
    if batch * n_tok <= max_rows:
        return batch                       # whole batch in one grid step
    for cand in range(batch - 1, 0, -1):
        rows = cand * n_tok
        if batch % cand == 0 and rows % 8 == 0 and rows <= max_rows:
            return cand
    return batch                           # fallback: full array (always legal)


def prenorm_attn(x, x2, params, *, eps=1e-5, max_block_rows=256):
    """fn(LayerNorm(x), LayerNorm(x2)) with single-head cross-attention `fn`."""
    B, N, D = x.shape
    assert x2.shape == x.shape
    assert D == params["dim"]
    dp, pad = params["dp"], params["pad"]

    b_blk = _pick_batch_block(B, N, max_block_rows)
    rows = b_blk * N
    grid = (B // b_blk,)

    def flat_pad(v):                       # bf16 DMA, cast before pad
        vf = v.astype(jnp.bfloat16).reshape(B * N, D)
        return jnp.pad(vf, ((0, 0), (0, pad))) if pad else vf

    xf, x2f = flat_pad(x), flat_pad(x2)

    kernel = functools.partial(_prenorm_attn_kernel, eps=eps, d_actual=D,
                               pad=pad, b_blk=b_blk, n_tok=N)

    tok_spec = pl.BlockSpec((rows, dp), lambda i: (i, 0))
    gb_spec = pl.BlockSpec((2, dp), lambda i: (0, 0))
    # Weight block indices never change across the grid, so Pallas keeps them
    # resident.  (TODO for ViT-scale DP: pl.Buffered(1) / VMEM staging to drop
    # the double-buffered weight footprint on v7x's 64 MiB VMEM.)
    wq_spec = pl.BlockSpec((dp, dp), lambda i: (0, 0))
    wkv_spec = pl.BlockSpec((dp, 2 * dp), lambda i: (0, 0))
    wo_spec = pl.BlockSpec((dp, dp), lambda i: (0, 0))

    flops = B * (8 * N * dp * dp + 4 * N * N * dp)
    transcendentals = B * (N * N + 3 * N)           # exp + rsqrt + reciprocal
    bytes_accessed = (2 * B * N * dp * 2            # bf16 token inputs
                      + B * N * dp * x.dtype.itemsize   # output
                      + 4 * dp * dp * 2             # bf16 weights
                      + 2 * dp * 4)                 # fused gamma/beta

    out_flat = pl.pallas_call(
        kernel,
        out_shape=jax.ShapeDtypeStruct((B * N, dp), x.dtype),
        grid_spec=pltpu.PrefetchScalarGridSpec(
            num_scalar_prefetch=0,
            grid=grid,
            in_specs=[tok_spec, tok_spec, gb_spec, wq_spec, wkv_spec, wo_spec],
            out_specs=tok_spec,
        ),
        compiler_params=pltpu.CompilerParams(
            dimension_semantics=("parallel",),      # batch blocks across TCs
            vmem_limit_bytes=64 * 1024 * 1024),     # <= v7x physical VMEM
        cost_estimate=pl.CostEstimate(
            flops=int(flops),
            transcendentals=int(transcendentals),
            bytes_accessed=int(bytes_accessed)),
    )(xf, x2f, params["gb"], params["wq"], params["wkv"], params["wo"])

    out = out_flat.reshape(B, N, dp)
    # Padded feature columns are exactly zero; skip the slice when pad == 0.
    return out if pad == 0 else out[:, :, :D]


def prenorm_attn_reference(x, x2, gamma, beta, wq, wk, wv, wo, *, eps=1e-5):
    """Pure-JAX (f32) reference mirroring the PyTorch forward."""
    def ln(v):
        mu = jnp.mean(v, axis=-1, keepdims=True)
        var = jnp.mean((v - mu) ** 2, axis=-1, keepdims=True)
        return (v - mu) / jnp.sqrt(var + eps) * gamma + beta

    xn, x2n = ln(x), ln(x2)
    q = jnp.einsum("bnd,de->bne", xn, wq)
    k = jnp.einsum("bnd,de->bne", x2n, wk)
    v = jnp.einsum("bnd,de->bne", x2n, wv)
    s = jnp.einsum("bqd,bkd->bqk", q, k) / jnp.sqrt(jnp.float32(x.shape[-1]))
    p = jax.nn.softmax(s, axis=-1)
    ctx = jnp.einsum("bqk,bkd->bqd", p, v)
    return jnp.einsum("bnd,de->bne", ctx, wo)


if __name__ == "__main__":
    B, N, D = 2, 8, 32  # batch, tokens, hidden dim

    key = jax.random.PRNGKey(0)
    kx, kx2, kg, kb, kq, kk, kv, ko = jax.random.split(key, 8)

    x = jax.random.normal(kx, (B, N, D), dtype=jnp.float32)
    x2 = jax.random.normal(kx2, (B, N, D), dtype=jnp.float32)

    # LayerNorm params (PyTorch default init is ones/zeros; perturb so the
    # affine transform is exercised, deterministically).
    gamma = 1.0 + 0.1 * jax.random.normal(kg, (D,), dtype=jnp.float32)
    beta = 0.1 * jax.random.normal(kb, (D,), dtype=jnp.float32)

    # Injected `fn` = single-head cross-attention; parameters stored in bf16.
    def init_w(k):
        return (jax.random.normal(k, (D, D), dtype=jnp.float32)
                / jnp.sqrt(D)).astype(jnp.bfloat16)
    wq, wk, wv, wo = init_w(kq), init_w(kk), init_w(kv), init_w(ko)

    # One-time parameter prep (padding, W_kv fusion, scale fold, bf16).
    params = prepare_prenorm_attn_params(gamma, beta, wq, wk, wv, wo, dim=D)

    out = prenorm_attn(x, x2, params)
    out = jax.block_until_ready(out)

    ref = prenorm_attn_reference(
        x, x2, gamma, beta,
        wq.astype(jnp.float32), wk.astype(jnp.float32),
        wv.astype(jnp.float32), wo.astype(jnp.float32))

    assert out.shape == (B, N, D)
    # bf16 token DMA + bf16 MXU feeds + EUP approx reciprocal are intentional
    # inference-precision tradeoffs vs the f32 PyTorch module.
    assert jnp.allclose(out, ref, rtol=3e-2, atol=3e-2), "mismatch vs reference"

    print("KERNEL_OK")
</pallas_src>

<mosaic_0001>
module attributes {stable_mosaic.version = 11 : i64} {
  func.func @_prenorm_attn_kernel(%arg0: i32, %arg1: memref<16x128xbf16, #tpu.memory_space<vmem>>, %arg2: memref<16x128xbf16, #tpu.memory_space<vmem>>, %arg3: memref<2x128xf32, #tpu.memory_space<vmem>>, %arg4: memref<128x128xbf16, #tpu.memory_space<vmem>>, %arg5: memref<128x256xbf16, #tpu.memory_space<vmem>>, %arg6: memref<128x128xbf16, #tpu.memory_space<vmem>>, %arg7: memref<16x128xf32, #tpu.memory_space<vmem>>) attributes {dimension_semantics = [#tpu.dimension_semantics<parallel>], iteration_bounds = array<i64: 1>, scalar_prefetch = 0 : i64, scratch_operands = 0 : i64, tpu.core_type = #tpu.core_type<tc>, window_params = [{transform_indices = @transform_0, window_bounds = array<i64: 16, 128>}, {transform_indices = @transform_1, window_bounds = array<i64: 16, 128>}, {pipeline_mode = #tpu.pipeline_mode<synchronous>, transform_indices = @transform_2, window_bounds = array<i64: 2, 128>}, {pipeline_mode = #tpu.pipeline_mode<synchronous>, transform_indices = @transform_3, window_bounds = array<i64: 128, 128>}, {pipeline_mode = #tpu.pipeline_mode<synchronous>, transform_indices = @transform_4, window_bounds = array<i64: 128, 256>}, {pipeline_mode = #tpu.pipeline_mode<synchronous>, transform_indices = @transform_5, window_bounds = array<i64: 128, 128>}, {transform_indices = @transform_6, window_bounds = array<i64: 16, 128>}]} {
    %c0 = arith.constant 0 : index
    %c0_0 = arith.constant 0 : index
    %0 = vector.load %arg3[%c0, %c0_0] : memref<2x128xf32, #tpu.memory_space<vmem>>, vector<2x128xf32>
    %1 = vector.extract_strided_slice %0 {offsets = [0, 0], sizes = [1, 128], strides = [1, 1]} : vector<2x128xf32> to vector<1x128xf32>
    %2 = vector.extract_strided_slice %0 {offsets = [1, 0], sizes = [1, 128], strides = [1, 1]} : vector<2x128xf32> to vector<1x128xf32>
    %3 = tpu.iota {dimensions = array<i32: 1>} : vector<16x128xi32>
    %c32_i32 = arith.constant 32 : i32
    %4 = vector.broadcast %c32_i32 : i32 to vector<16x128xi32>
    %5 = arith.cmpi slt, %3, %4 : vector<16x128xi32>
    %c0_1 = arith.constant 0 : index
    %c0_2 = arith.constant 0 : index
    %6 = vector.load %arg1[%c0_1, %c0_2] : memref<16x128xbf16, #tpu.memory_space<vmem>>, vector<16x128xbf16>
    %7 = arith.extf %6 : vector<16x128xbf16> to vector<16x128xf32>
    %cst = arith.constant dense<0.000000e+00> : vector<16xf32>
    %8 = vector.multi_reduction <add>, %7, %cst [1] : vector<16x128xf32> to vector<16xf32>
    %9 = vector.shape_cast %8 : vector<16xf32> to vector<16x1xf32>
    %cst_3 = arith.constant 3.125000e-02 : f32
    %10 = vector.broadcast %cst_3 : f32 to vector<16x1xf32>
    %11 = arith.mulf %9, %10 : vector<16x1xf32>
    %12 = vector.broadcast %11 : vector<16x1xf32> to vector<16x128xf32>
    %13 = arith.subf %7, %12 : vector<16x128xf32>
    %cst_4 = arith.constant 0.000000e+00 : f32
    %14 = vector.broadcast %cst_4 : f32 to vector<16x128xf32>
    %15 = arith.select %5, %13, %14 : vector<16x128xi1>, vector<16x128xf32>
    %16 = arith.mulf %15, %15 : vector<16x128xf32>
    %cst_5 = arith.constant dense<0.000000e+00> : vector<16xf32>
    %17 = vector.multi_reduction <add>, %16, %cst_5 [1] : vector<16x128xf32> to vector<16xf32>
    %18 = vector.shape_cast %17 : vector<16xf32> to vector<16x1xf32>
    %cst_6 = arith.constant 3.125000e-02 : f32
    %19 = vector.broadcast %cst_6 : f32 to vector<16x1xf32>
    %20 = arith.mulf %18, %19 : vector<16x1xf32>
    %cst_7 = arith.constant 9.99999974E-6 : f32
    %21 = vector.broadcast %cst_7 : f32 to vector<16x1xf32>
    %22 = arith.addf %20, %21 : vector<16x1xf32>
    %23 = math.rsqrt %22 : vector<16x1xf32>
    %24 = vector.broadcast %23 : vector<16x1xf32> to vector<16x128xf32>
    %25 = arith.mulf %15, %24 : vector<16x128xf32>
    %26 = vector.broadcast %1 : vector<1x128xf32> to vector<16x128xf32>
    %27 = arith.mulf %25, %26 : vector<16x128xf32>
    %28 = vector.broadcast %2 : vector<1x128xf32> to vector<16x128xf32>
    %29 = arith.addf %27, %28 : vector<16x128xf32>
    %30 = arith.truncf %29 : vector<16x128xf32> to vector<16x128xbf16>
    %c0_8 = arith.constant 0 : index
    %c0_9 = arith.constant 0 : index
    %31 = vector.load %arg2[%c0_8, %c0_9] : memref<16x128xbf16, #tpu.memory_space<vmem>>, vector<16x128xbf16>
    %32 = arith.extf %31 : vector<16x128xbf16> to vector<16x128xf32>
    %cst_10 = arith.constant dense<0.000000e+00> : vector<16xf32>
    %33 = vector.multi_reduction <add>, %32, %cst_10 [1] : vector<16x128xf32> to vector<16xf32>
    %34 = vector.shape_cast %33 : vector<16xf32> to vector<16x1xf32>
    %cst_11 = arith.constant 3.125000e-02 : f32
    %35 = vector.broadcast %cst_11 : f32 to vector<16x1xf32>
    %36 = arith.mulf %34, %35 : vector<16x1xf32>
    %37 = vector.broadcast %36 : vector<16x1xf32> to vector<16x128xf32>
    %38 = arith.subf %32, %37 : vector<16x128xf32>
    %cst_12 = arith.constant 0.000000e+00 : f32
    %39 = vector.broadcast %cst_12 : f32 to vector<16x128xf32>
    %40 = arith.select %5, %38, %39 : vector<16x128xi1>, vector<16x128xf32>
    %41 = arith.mulf %40, %40 : vector<16x128xf32>
    %cst_13 = arith.constant dense<0.000000e+00> : vector<16xf32>
    %42 = vector.multi_reduction <add>, %41, %cst_13 [1] : vector<16x128xf32> to vector<16xf32>
    %43 = vector.shape_cast %42 : vector<16xf32> to vector<16x1xf32>
    %cst_14 = arith.constant 3.125000e-02 : f32
    %44 = vector.broadcast %cst_14 : f32 to vector<16x1xf32>
    %45 = arith.mulf %43, %44 : vector<16x1xf32>
    %cst_15 = arith.constant 9.99999974E-6 : f32
    %46 = vector.broadcast %cst_15 : f32 to vector<16x1xf32>
    %47 = arith.addf %45, %46 : vector<16x1xf32>
    %48 = math.rsqrt %47 : vector<16x1xf32>
    %49 = vector.broadcast %48 : vector<16x1xf32> to vector<16x128xf32>
    %50 = arith.mulf %40, %49 : vector<16x128xf32>
    %51 = vector.broadcast %1 : vector<1x128xf32> to vector<16x128xf32>
    %52 = arith.mulf %50, %51 : vector<16x128xf32>
    %53 = vector.broadcast %2 : vector<1x128xf32> to vector<16x128xf32>
    %54 = arith.addf %52, %53 : vector<16x128xf32>
    %55 = arith.truncf %54 : vector<16x128xf32> to vector<16x128xbf16>
    %c0_16 = arith.constant 0 : index
    %c0_17 = arith.constant 0 : index
    %56 = vector.load %arg4[%c0_16, %c0_17] : memref<128x128xbf16, #tpu.memory_space<vmem>>, vector<128x128xbf16>
    %cst_18 = arith.constant dense<0.000000e+00> : vector<16x128xf32>
    %57 = tpu.matmul %30, %56, %cst_18 {dimension_numbers = #tpu.dot_dimension_numbers<[1], [0], [0], [1], [0, 0, 1, 1], [], []>} : vector<16x128xbf16>, vector<128x128xbf16>, vector<16x128xf32> -> vector<16x128xf32>
    %c0_19 = arith.constant 0 : index
    %c0_20 = arith.constant 0 : index
    %58 = vector.load %arg5[%c0_19, %c0_20] : memref<128x256xbf16, #tpu.memory_space<vmem>>, vector<128x256xbf16>
    %cst_21 = arith.constant dense<0.000000e+00> : vector<16x256xf32>
    %59 = tpu.matmul %55, %58, %cst_21 {dimension_numbers = #tpu.dot_dimension_numbers<[1], [0], [0], [1], [0, 0, 1, 1], [], []>} : vector<16x128xbf16>, vector<128x256xbf16>, vector<16x256xf32> -> vector<16x256xf32>
    %60 = vector.extract_strided_slice %59 {offsets = [0, 0], sizes = [16, 128], strides = [1, 1]} : vector<16x256xf32> to vector<16x128xf32>
    %61 = vector.extract_strided_slice %59 {offsets = [0, 128], sizes = [16, 128], strides = [1, 1]} : vector<16x256xf32> to vector<16x128xf32>
    %62 = vector.shape_cast %57 : vector<16x128xf32> to vector<2x8x128xf32>
    %63 = vector.shape_cast %60 : vector<16x128xf32> to vector<2x8x128xf32>
    %64 = vector.shape_cast %61 : vector<16x128xf32> to vector<2x8x128xf32>
    %65 = arith.truncf %64 : vector<2x8x128xf32> to vector<2x8x128xbf16>
    %cst_22 = arith.constant dense<0.000000e+00> : vector<2x8x8xf32>
    %66 = tpu.matmul %62, %63, %cst_22 {dimension_numbers = #tpu.dot_dimension_numbers<[2], [2], [1], [1], [0, 0, 0, 1, 1, 1], [0], [0]>} : vector<2x8x128xf32>, vector<2x8x128xf32>, vector<2x8x8xf32> -> vector<2x8x8xf32>
    %cst_23 = arith.constant dense<0xFF800000> : vector<2x8xf32>
    %67 = vector.multi_reduction <maximumf>, %66, %cst_23 [2] : vector<2x8x8xf32> to vector<2x8xf32>
    %68 = vector.shape_cast %67 : vector<2x8xf32> to vector<2x8x1xf32>
    %69 = vector.broadcast %68 : vector<2x8x1xf32> to vector<2x8x8xf32>
    %70 = arith.subf %66, %69 : vector<2x8x8xf32>
    %71 = math.exp %70 : vector<2x8x8xf32>
    %cst_24 = arith.constant dense<0.000000e+00> : vector<2x8xf32>
    %72 = vector.multi_reduction <add>, %71, %cst_24 [2] : vector<2x8x8xf32> to vector<2x8xf32>
    %73 = vector.shape_cast %72 : vector<2x8xf32> to vector<2x8x1xf32>
    %74 = tpu.reciprocal %73 {approx = true} : vector<2x8x1xf32> -> vector<2x8x1xf32>
    %75 = vector.broadcast %74 : vector<2x8x1xf32> to vector<2x8x8xf32>
    %76 = arith.mulf %71, %75 : vector<2x8x8xf32>
    %77 = arith.truncf %76 : vector<2x8x8xf32> to vector<2x8x8xbf16>
    %cst_25 = arith.constant dense<0.000000e+00> : vector<2x8x128xf32>
    %78 = tpu.matmul %77, %65, %cst_25 {dimension_numbers = #tpu.dot_dimension_numbers<[2], [1], [1], [2], [0, 0, 0, 1, 1, 2], [0], [0]>} : vector<2x8x8xbf16>, vector<2x8x128xbf16>, vector<2x8x128xf32> -> vector<2x8x128xf32>
    %79 = vector.shape_cast %78 : vector<2x8x128xf32> to vector<16x128xf32>
    %80 = arith.truncf %79 : vector<16x128xf32> to vector<16x128xbf16>
    %c0_26 = arith.constant 0 : index
    %c0_27 = arith.constant 0 : index
    %81 = vector.load %arg6[%c0_26, %c0_27] : memref<128x128xbf16, #tpu.memory_space<vmem>>, vector<128x128xbf16>
    %cst_28 = arith.constant dense<0.000000e+00> : vector<16x128xf32>
    %82 = tpu.matmul %80, %81, %cst_28 {dimension_numbers = #tpu.dot_dimension_numbers<[1], [0], [0], [1], [0, 0, 1, 1], [], []>} : vector<16x128xbf16>, vector<128x128xbf16>, vector<16x128xf32> -> vector<16x128xf32>
    %c0_29 = arith.constant 0 : index
    %c0_30 = arith.constant 0 : index
    %83 = vector.load %arg7[%c0_29, %c0_30] : memref<16x128xf32, #tpu.memory_space<vmem>>, vector<16x128xf32>
    tpu.vector_store %arg7[%c0_29, %c0_30], %82 {strides = array<i32>} : memref<16x128xf32, #tpu.memory_space<vmem>>, vector<16x128xf32>,
    return
  }
  func.func @transform_0(%arg0: i32) -> (i32, i32) {
    %c0_i32 = arith.constant 0 : i32
    %c0_i32_0 = arith.constant 0 : i32
    return %arg0, %c0_i32 : i32, i32
  }
  func.func @transform_1(%arg0: i32) -> (i32, i32) {
    %c0_i32 = arith.constant 0 : i32
    %c0_i32_0 = arith.constant 0 : i32
    return %arg0, %c0_i32 : i32, i32
  }
  func.func @transform_2(%arg0: i32) -> (i32, i32) {
    %c0_i32 = arith.constant 0 : i32
    %c0_i32_0 = arith.constant 0 : i32
    %c0_i32_1 = arith.constant 0 : i32
    return %c0_i32, %c0_i32_0 : i32, i32
  }
  func.func @transform_3(%arg0: i32) -> (i32, i32) {
    %c0_i32 = arith.constant 0 : i32
    %c0_i32_0 = arith.constant 0 : i32
    %c0_i32_1 = arith.constant 0 : i32
    return %c0_i32, %c0_i32_0 : i32, i32
  }
  func.func @transform_4(%arg0: i32) -> (i32, i32) {
    %c0_i32 = arith.constant 0 : i32
    %c0_i32_0 = arith.constant 0 : i32
    %c0_i32_1 = arith.constant 0 : i32
    return %c0_i32, %c0_i32_0 : i32, i32
  }
  func.func @transform_5(%arg0: i32) -> (i32, i32) {
    %c0_i32 = arith.constant 0 : i32
    %c0_i32_0 = arith.constant 0 : i32
    %c0_i32_1 = arith.constant 0 : i32
    return %c0_i32, %c0_i32_0 : i32, i32
  }
  func.func @transform_6(%arg0: i32) -> (i32, i32) {
    %c0_i32 = arith.constant 0 : i32
    %c0_i32_0 = arith.constant 0 : i32
    return %arg0, %c0_i32 : i32, i32
  }
}

</mosaic_0001>

<bundles_post_ra>
// kernel: tpu_custom_call.1
= control target key start
LH: loop header
LB: loop body
LE: loop exit
PB: predicated region body
PF: predicated region fallthrough
CT: control target
= control target key end

     0   :  { %11 = vsyncpa [#allocation3], 0  ;;  %s1397_s0 = inlined_call_operand.hbm [shape: bf16[16,128], index: 0, kind: input, shape index: {}]   ;;  %s1398_s1 = inlined_call_operand.hbm [shape: bf16[16,128], index: 1, kind: input, shape index: {}]   ;;  %s1399_s2 = inlined_call_operand.hbm [shape: f32[2,128], index: 2, kind: input, shape index: {}]   ;;  %s1400_s3 = inlined_call_operand.hbm [shape: bf16[128,128], index: 3, kind: input, shape index: {}]   ;;  %s1401_s4 = inlined_call_operand.hbm [shape: bf16[128,256], index: 4, kind: input, shape index: {}]   ;;  %s1402_s5 = inlined_call_operand.hbm [shape: bf16[128,128], index: 5, kind: input, shape index: {}]   ;;  %s1403_s6 = inlined_call_operand.hbm [shape: f32[16,128], index: 6, kind: output, shape index: {}]  }
   0x1   :  { %12 = vsyncpa [#allocation6], 0 }
   0x2   :  { %13 = vsyncpa [#allocation9], 0 }
   0x3   :  { %14 = vsyncpa [#allocation12], 0 }
   0x4   :  { %15 = vsyncpa [#allocation4], 0  ;;  %s1179_s21 = smov [#allocation5]   ;;  %s1180_s23 = smov [#allocation8]  }
   0x5   :  { %s33_s22 = sshll.u32 %s1179_s21, 4  ;;  %s55_s24 = sshll.u32 %s1180_s23, 4  ;;  %s34_s22 = int_to_ptr.vmem [resolvable:$true] %s33_s22  ;;  %s1228_s24 = int_to_ptr.vmem [resolvable:$true] %s55_s24 }
   0x6   :  { %s1015_s27 = scalar_lea.hbm %s1398_s1, 128 }
   0x7   :  { %p1016_p0 = scmp.ne.s32.totalorder %s1398_s1, %s1015_s27  ;;  %p1019_p1 = scmp.lt.u32.totalorder %s1015_s27, %s1398_s1 }
   0x9   :  { %p1021_p2 = pnand %p1019_p1, %p1016_p0 }
   0xb   :  { %1024 = shalt.err (!%p1021_p2)
}
   0xc   :  { %s1025_s8 = scalar_lea.vmem %s34_s22, 128  ;;  %p1030_p4 = scmp.lt.s32.totalorder %s34_s22, %s34_s22 }
   0xd   :  { %p1026_p3 = scmp.ne.s32.totalorder %s34_s22, %s1025_s8  ;;  %p1031_p5 = scmp.lt.s32.totalorder %s1025_s8, %s1025_s8 }
   0xf   :  { %p1032_p6 = por %p1031_p5, %p1030_p4 }
  0x11   :  { %p1033_p7 = pnand %p1032_p6, %p1026_p3 }
  0x13   :  { %1036 = shalt.err (!%p1033_p7)
}
  0x14   :  { %s1181_s9 = smov 64   ;;  %s1182_s10 = smov 4  }
  0x15   :  { %39 = dma.hbm_to_vmem [thread:$0]  %s1398_s1, 128, %s34_s22, [#allocation6], %s1181_s9, %s1181_s9, %s1182_s10  }
  0x16   :  { %s1037_s15 = scalar_lea.hbm %s1400_s3, 1024 }
  0x17   :  { %p1038_p8 = scmp.ne.s32.totalorder %s1400_s3, %s1037_s15  ;;  %p1041_p9 = scmp.lt.u32.totalorder %s1037_s15, %s1400_s3 }
  0x19   :  { %p1043_p10 = pnand %p1041_p9, %p1038_p8 }
  0x1b   :  { %1046 = shalt.err (!%p1043_p10)
}
  0x1c   :  { %s1047_s20 = scalar_lea.vmem %s1228_s24, 1024  ;;  %p1052_p12 = scmp.lt.s32.totalorder %s1228_s24, %s1228_s24 }
  0x1d   :  { %p1048_p11 = scmp.ne.s32.totalorder %s1228_s24, %s1047_s20  ;;  %p1053_p13 = scmp.lt.s32.totalorder %s1047_s20, %s1047_s20 }
  0x1f   :  { %p1054_p0 = por %p1053_p13, %p1052_p12 }
  0x21   :  { %p1055_p1 = pnand %p1054_p0, %p1048_p11 }
  0x23   :  { %1058 = shalt.err (!%p1055_p1)
}
  0x24   :  { %61 = dma.hbm_to_vmem [thread:$0]  %s1400_s3, 1024, %s1228_s24, [#allocation9], %s1181_s9, %s1181_s9, %s1182_s10  }
  0x25   :  { %s1183_s22 = smov [#allocation2]   ;;  %s1184_s25 = smov [#allocation7]  }
  0x26   :  { %s21_s23 = sshll.u32 %s1183_s22, 4  ;;  %s46_s26 = sshll.u32 %s1184_s25, 4  ;;  %s22_s23 = int_to_ptr.vmem [resolvable:$true] %s21_s23  ;;  %s47_s26 = int_to_ptr.vmem [resolvable:$true] %s46_s26 }
  0x27   :  { %s1059_s29 = scalar_lea.hbm %s1397_s0, 128 }
  0x28   :  { %p1060_p2 = scmp.ne.s32.totalorder %s1397_s0, %s1059_s29  ;;  %p1063_p3 = scmp.lt.u32.totalorder %s1059_s29, %s1397_s0 }
  0x2a   :  { %p1065_p4 = pnand %p1063_p3, %p1060_p2 }
  0x2c   :  { %1068 = shalt.err (!%p1065_p4)
}
  0x2d   :  { %s1069_s3 = scalar_lea.vmem %s22_s23, 128  ;;  %p1074_p6 = scmp.lt.s32.totalorder %s22_s23, %s22_s23 }
  0x2e   :  { %p1070_p5 = scmp.ne.s32.totalorder %s22_s23, %s1069_s3  ;;  %p1075_p7 = scmp.lt.s32.totalorder %s1069_s3, %s1069_s3 }
  0x30   :  { %p1076_p8 = por %p1075_p7, %p1074_p6 }
  0x32   :  { %p1077_p9 = pnand %p1076_p8, %p1070_p5 }
  0x34   :  { %1080 = shalt.err (!%p1077_p9)
}
  0x35   :  { %27 = dma.hbm_to_vmem [thread:$0]  %s1397_s0, 128, %s22_s23, [#allocation3], %s1181_s9, %s1181_s9, %s1182_s10  }
  0x36   :  { %s1081_s15 = scalar_lea.hbm %s1399_s2, 32 }
  0x37   :  { %p1082_p10 = scmp.ne.s32.totalorder %s1399_s2, %s1081_s15  ;;  %p1085_p11 = scmp.lt.u32.totalorder %s1081_s15, %s1399_s2 }
  0x39   :  { %p1087_p12 = pnand %p1085_p11, %p1082_p10 }
  0x3b   :  { %1090 = shalt.err (!%p1087_p12)
}
  0x3c   :  { %s1091_s20 = scalar_lea.vmem %s47_s26, 32  ;;  %p1096_p0 = scmp.lt.s32.totalorder %s47_s26, %s47_s26 }
  0x3d   :  { %p1092_p13 = scmp.ne.s32.totalorder %s47_s26, %s1091_s20  ;;  %p1097_p1 = scmp.lt.s32.totalorder %s1091_s20, %s1091_s20 }
  0x3f   :  { %p1098_p2 = por %p1097_p1, %p1096_p0 }
  0x41   :  { %p1099_p3 = pnand %p1098_p2, %p1092_p13 }
  0x43   :  { %1102 = shalt.err (!%p1099_p3)
}
  0x44   :  { %49 = dma.hbm_to_vmem [thread:$0]  %s1399_s2, 32, %s47_s26, [#allocation6]  }
  0x45   :  { %s1185_s21 = smov [#allocation10]   ;;  %s1103_s27 = scalar_lea.hbm %s1401_s4, 2048 }
  0x46   :  { %s67_s22 = sshll.u32 %s1185_s21, 4  ;;  %p1104_p4 = scmp.ne.s32.totalorder %s1401_s4, %s1103_s27  ;;  %s68_s22 = int_to_ptr.vmem [resolvable:$true] %s67_s22 }
  0x47   :  { %p1107_p5 = scmp.lt.u32.totalorder %s1103_s27, %s1401_s4 }
  0x49   :  { %p1109_p6 = pnand %p1107_p5, %p1104_p4 }
  0x4b   :  { %1112 = shalt.err (!%p1109_p6)
}
  0x4c   :  { %s1113_s8 = scalar_lea.vmem %s68_s22, 2048  ;;  %p1118_p8 = scmp.lt.s32.totalorder %s68_s22, %s68_s22 }
  0x4d   :  { %p1114_p7 = scmp.ne.s32.totalorder %s68_s22, %s1113_s8  ;;  %p1119_p9 = scmp.lt.s32.totalorder %s1113_s8, %s1113_s8 }
  0x4f   :  { %p1120_p10 = por %p1119_p9, %p1118_p8 }
  0x51   :  { %p1121_p11 = pnand %p1120_p10, %p1114_p7 }
  0x53   :  { %1124 = shalt.err (!%p1121_p11)
}
  0x54   :  { %s1186_s2 = smov 128   ;;  %s1187_s26 = smov 8  }
  0x55   :  { %73 = dma.hbm_to_vmem [thread:$0]  %s1401_s4, 2048, %s68_s22, [#allocation9], %s1186_s2, %s1186_s2, %s1187_s26  }
  0x56   :  { %s1188_s24 = smov [#allocation11]   ;;  %s1125_s15 = scalar_lea.hbm %s1402_s5, 1024 }
  0x57   :  { %s79_s12 = sshll.u32 %s1188_s24, 4  ;;  %p1126_p12 = scmp.ne.s32.totalorder %s1402_s5, %s1125_s15  ;;  %s80_s12 = int_to_ptr.vmem [resolvable:$true] %s79_s12 }
  0x58   :  { %p1129_p13 = scmp.lt.u32.totalorder %s1125_s15, %s1402_s5 }
  0x5a   :  { %p1131_p0 = pnand %p1129_p13, %p1126_p12 }
  0x5c   :  { %1134 = shalt.err (!%p1131_p0)
}
  0x5d   :  { %s1135_s20 = scalar_lea.vmem %s80_s12, 1024  ;;  %p1140_p2 = scmp.lt.s32.totalorder %s80_s12, %s80_s12 }
  0x5e   :  { %p1136_p1 = scmp.ne.s32.totalorder %s80_s12, %s1135_s20  ;;  %p1141_p3 = scmp.lt.s32.totalorder %s1135_s20, %s1135_s20 }
  0x60   :  { %p1142_p4 = por %p1141_p3, %p1140_p2 }
  0x62   :  { %p1143_p5 = pnand %p1142_p4, %p1136_p1 }
  0x64   :  { %1146 = shalt.err (!%p1143_p5)
}
  0x65   :  { %85 = dma.hbm_to_vmem [thread:$0]  %s1402_s5, 1024, %s80_s12, [#allocation12], %s1181_s9, %s1181_s9, %s1182_s10  }
  0x66   :  { %1169 = dma.done.wait [#allocation3], 128  }
  0x67   :  { %1170 = vsyncadd [#allocation3], 4294967168 }
  0x68   :  { %1171 = dma.done.wait [#allocation6], 160  }
  0x69   :  { %1172 = vsyncadd [#allocation6], 4294967136 }
  0x6a   :  { %1173 = dma.done.wait [#allocation9], 3072  }
  0x6b   :  { %1174 = vsyncadd [#allocation9], 4294964224 }
  0x6c   :  { %1175 = dma.done.wait [#allocation12], 1024  }
  0x6d   :  { %1176 = vsyncadd [#allocation12], 4294966272  ;;  %v854_v0 = vld [vmem:[#allocation5] sm:$0xff]   ;;  %v850_v1 = vld [vmem:[#allocation2] sm:$0xff]   ;;  %v1189_v8 = vmov 0.0   ;;  %v106_v10 = vlaneseq  ;;  %v1190_v47 = vmov 0  }
  0x6e   :  { %v855_v2 = vunpack.c.l.bf16 %v854_v0  ;;  %v851_v3 = vunpack.c.l.bf16 %v850_v1  ;;  %v856_v4 = vunpack.c.h.bf16 %v854_v0  ;;  %v852_v5 = vunpack.c.h.bf16 %v850_v1  ;;  %v959_v6 = vld [vmem:[#allocation10 + $0x4] ss:$8 sps:$4 sm:$0xff]   ;;  %v961_v7 = vld [vmem:[#allocation10] ss:$8 sps:$4 sm:$0xff]   ;;  %883 = vmatprep.subr.bf16.mxu0 %v1189_v8  ;;  %v962_v9 = vld [vmem:[#allocation10 + $0x14] ss:$8 sps:$4 sm:$0xff]   ;;  %416 = vmatprep.mubr.bf16.mxu1 %v1190_v47 }
  0x6f   :  { %384 = vmatprep.subr.bf16.mxu1 %v959_v6  ;;  %v107_v11 = vand.u32 127, %v106_v10  ;;  %v964_v32 = vld [vmem:[#allocation8] sm:$0xff]   ;;  %v965_v33 = vld [vmem:[#allocation10 + $0x10] ss:$8 sps:$4 sm:$0xff]   ;;  %v968_v35 = vld [vmem:[#allocation8 + $0x8] sm:$0xff]   ;;  %vm1191_vm1 = vmmov 0  }
  0x70   :  { %154 = vadd.xlane.f32.xlu0 %v855_v2  ;;  %113 = vadd.xlane.f32.xlu1 %v851_v3  ;;  %v966_v34 = vld [vmem:[#allocation10 + $0x24] ss:$8 sps:$4 sm:$0xff]   ;;  %v969_v36 = vld [vmem:[#allocation10 + $0x20] ss:$8 sps:$4 sm:$0xff]   ;;  %v970_v37 = vld [vmem:[#allocation10 + $0x34] ss:$8 sps:$4 sm:$0xff]  }
  0x71   :  { %385 = vmatpush1.bf16.msra.mxu1 %v961_v7  ;;  %vm108_vm0 = vcmp.lt.s32.totalorder %v107_v11, 32  ;;  %884 = vmatpush3.bf16.msra.mxu0 %v964_v32  ;;  %v972_v38 = vld [vmem:[#allocation8 + $0x10] sm:$0xff]   ;;  %v974_v40 = vld [vmem:[#allocation10 + $0x44] ss:$8 sps:$4 sm:$0xff]   ;;  %v976_v41 = vld [vmem:[#allocation8 + $0x18] sm:$0xff]   ;;  %v138_v0 = vshrl.u32 %v106_v10, 7 }
  0x72   :  { %386 = vmatprep.subr.bf16.mxu1 %v962_v9  ;;  %885 = vmatprep.subr.bf16.mxu0 %v1189_v8  ;;  %v973_v39 = vld [vmem:[#allocation10 + $0x30] ss:$8 sps:$4 sm:$0xff]   ;;  %v977_v42 = vld [vmem:[#allocation10 + $0x40] ss:$8 sps:$4 sm:$0xff]   ;;  %v978_v43 = vld [vmem:[#allocation10 + $0x54] ss:$8 sps:$4 sm:$0xff]  }
  0x73   :  { %v980_v44 = vld [vmem:[#allocation8 + $0x20] sm:$0xff]   ;;  %v981_v45 = vld [vmem:[#allocation10 + $0x50] ss:$8 sps:$4 sm:$0xff]   ;;  %v984_v48 = vld [vmem:[#allocation8 + $0x28] sm:$0xff]   ;;  %899 = vmatprep.mubr.msk.bf16.mxu0 %vm1191_vm1, %v1189_v8  ;;  %v145_v6 = vsub.s32 1, %v138_v0  ;;  %vm597_vm2 = vcmask 1043456  }
  0x74   :  { %156 = vadd.xlane.f32.xlu0 %v856_v4  ;;  %115 = vadd.xlane.f32.xlu1 %v852_v5  ;;  %v982_v46 = vld [vmem:[#allocation10 + $0x64] ss:$8 sps:$4 sm:$0xff]   ;;  %v985_v49 = vld [vmem:[#allocation10 + $0x60] ss:$8 sps:$4 sm:$0xff]   ;;  %v986_v50 = vld [vmem:[#allocation10 + $0x74] ss:$8 sps:$4 sm:$0xff]  }
  0x75   :  { %387 = vmatpush1.bf16.msra.mxu1 %v965_v33  ;;  %886 = vmatpush3.bf16.msra.mxu0 %v968_v35  ;;  %v988_v51 = vld [vmem:[#allocation8 + $0x30] sm:$0xff]   ;;  %v990_v53 = vld [vmem:[#allocation8 + $0x38] sm:$0xff]   ;;  %vm569_vm3 = vcmask 64512   ;;  %s1192_s5 = smov [#allocation13]  }
  0x76   :  { %388 = vmatprep.subr.bf16.mxu1 %v966_v34  ;;  %887 = vmatprep.subr.bf16.mxu0 %v1189_v8  ;;  %v989_v52 = vld [vmem:[#allocation10 + $0x70] ss:$8 sps:$4 sm:$0xff]   ;;  %s800_s9 = sshll.u32 %s1192_s5, 4  ;;  %s801_s9 = int_to_ptr.vmem [resolvable:$true] %s800_s9 }
  0x77   :  { %s1147_s10 = scalar_lea.vmem %s801_s9, 256  ;;  %p1152_p7 = scmp.lt.s32.totalorder %s801_s9, %s801_s9 }
  0x78   :  { %p1148_p6 = scmp.ne.s32.totalorder %s801_s9, %s1147_s10  ;;  %p1153_p8 = scmp.lt.s32.totalorder %s1147_s10, %s1147_s10 }
  0x79   :  { %389 = vmatpush1.bf16.msra.mxu1 %v969_v36  ;;  %888 = vmatpush3.bf16.msra.mxu0 %v972_v38 }
  0x7a   :  { %390 = vmatprep.subr.bf16.mxu1 %v970_v37  ;;  %889 = vmatprep.subr.bf16.mxu0 %v1189_v8  ;;  %p1154_p9 = por %p1153_p8, %p1152_p7 }
  0x7c   :  { %p1155_p10 = pnand %p1154_p9, %p1148_p6 }
  0x7d   :  { %391 = vmatpush1.bf16.msra.mxu1 %v973_v39  ;;  %890 = vmatpush3.bf16.msra.mxu0 %v976_v41 }
  0x7e   :  { %392 = vmatprep.subr.bf16.mxu1 %v974_v40  ;;  %891 = vmatprep.subr.bf16.mxu0 %v1189_v8 }
  0x81   :  { %393 = vmatpush1.bf16.msra.mxu1 %v977_v42  ;;  %892 = vmatpush3.bf16.msra.mxu0 %v980_v44 }
  0x82   :  { %394 = vmatprep.subr.bf16.mxu1 %v978_v43  ;;  %893 = vmatprep.subr.bf16.mxu0 %v1189_v8 }
  0x85   :  { %395 = vmatpush1.bf16.msra.mxu1 %v981_v45  ;;  %894 = vmatpush3.bf16.msra.mxu0 %v984_v48 }
  0x86   :  { %396 = vmatprep.subr.bf16.mxu1 %v982_v46  ;;  %895 = vmatprep.subr.bf16.mxu0 %v1189_v8 }
  0x89   :  { %397 = vmatpush1.bf16.msra.mxu1 %v985_v49  ;;  %896 = vmatpush3.bf16.msra.mxu0 %v988_v51 }
  0x8a   :  { %398 = vmatprep.subr.bf16.mxu1 %v986_v50  ;;  %897 = vmatprep.subr.bf16.mxu0 %v1189_v8 }
  0x8d   :  { %399 = vmatpush1.bf16.msra.mxu1 %v989_v52  ;;  %898 = vmatpush3.bf16.msra.mxu0 %v990_v53 }
  0x8e   :  { %903 = vmatprep.subr.mxu1 %v1189_v8  ;;  %925 = vmatprep.subr.bf16.mxu0 %v1189_v8 }
  0xfd   :  { %v155_v12 = vpop.xlane.xlu0 %154  ;;  %v114_v13 = vpop.xlane.xlu1 %113 }
  0xfe   :  { %v158_v14 = vmul.f32 0.03125, %v155_v12  ;;  %v117_v15 = vmul.f32 0.03125, %v114_v13 }
 0x100   :  { %v160_v16 = vsub.f32 %v855_v2, %v158_v14  ;;  %v119_v17 = vsub.f32 %v851_v3, %v117_v15  ;;  %v139_v3 = vsub.s32 0, %v138_v0 }
 0x101   :  { %v157_v18 = vpop.xlane.xlu0 %156  ;;  %v116_v19 = vpop.xlane.xlu1 %115 }
 0x102   :  { %v159_v20 = vmul.f32 0.03125, %v157_v18  ;;  %v1324_v21 = vsel %vm108_vm0, %v160_v16, 0.0  ;;  %v118_v22 = vmul.f32 0.03125, %v116_v19  ;;  %v1326_v23 = vsel %vm108_vm0, %v119_v17, 0.0 }
 0x103   :  { %v164_v24 = vmul.f32 %v1324_v21, %v1324_v21  ;;  %v123_v27 = vmul.f32 %v1326_v23, %v1326_v23 }
 0x104   :  { %v161_v25 = vsub.f32 %v856_v4, %v159_v20  ;;  %v120_v26 = vsub.f32 %v852_v5, %v118_v22  ;;  %v105_v4 = vld [vmem:[#allocation7] sm:$0x3] }
 0x105   :  { %166 = vadd.xlane.f32.xlu0 %v164_v24  ;;  %v140_v7 = vrot.slane %v105_v4, %v139_v3  ;;  %v146_v14 = vrot.slane %v105_v4, %v145_v6  ;;  %v996_v4 = vld [vmem:[#allocation11 + $0x28] sm:$0xff]   ;;  %v998_v6 = vld [vmem:[#allocation11 + $0x38] sm:$0xff]  }
 0x106   :  { %v1332_v28 = vsel %vm108_vm0, %v161_v25, 0.0  ;;  %v1334_v29 = vsel %vm108_vm0, %v120_v26, 0.0 }
 0x107   :  { %v165_v30 = vmul.f32 %v1332_v28, %v1332_v28  ;;  %v124_v31 = vmul.f32 %v1334_v29, %v1334_v29 }
 0x109   :  { %168 = vadd.xlane.f32.xlu1 %v165_v30  ;;  %125 = vadd.xlane.f32.xlu0 %v123_v27 }
 0x10d   :  { %127 = vadd.xlane.f32.xlu1 %v124_v31 }
 0x192   :  { %v167_v54 = vpop.xlane.xlu0 %166 }
 0x193   :  { %v170_v55 = vmul.f32 0.03125, %v167_v54 }
 0x195   :  { %v172_v56 = vadd.f32 1e-05, %v170_v55  ;;  %v991_v55 = vld [vmem:[#allocation11] sm:$0xff]  }
 0x196   :  { %v126_v57 = vpop.xlane.xlu0 %125  ;;  %v169_v58 = vpop.xlane.xlu1 %168 }
 0x197   :  { %999 = vrsqrt.f32 %v172_v56  ;;  %v129_v59 = vmul.f32 0.03125, %v126_v57  ;;  %v171_v60 = vmul.f32 0.03125, %v169_v58  ;;  %v992_v56 = vld [vmem:[#allocation11 + $0x8] sm:$0xff]   ;;  %v993_v57 = vld [vmem:[#allocation11 + $0x10] sm:$0xff]   ;;  %v994_v58 = vld [vmem:[#allocation11 + $0x18] sm:$0xff]  }
 0x199   :  { %v131_v61 = vadd.f32 1e-05, %v129_v59  ;;  %v173_v62 = vadd.f32 1e-05, %v171_v60  ;;  %v995_v59 = vld [vmem:[#allocation11 + $0x20] sm:$0xff]  }
 0x19a   :  { %v128_v63 = vpop.xlane.xlu1 %127 }
 0x19b   :  { %1001 = vrsqrt.f32 %v131_v61  ;;  %v130_v1 = vmul.f32 0.03125, %v128_v63 }
 0x19c   :  { %1003 = vrsqrt.f32 %v173_v62 }
 0x19d   :  { %v132_v2 = vadd.f32 1e-05, %v130_v1 }
 0x19f   :  { %1005 = vrsqrt.f32 %v132_v2 }
 0x1a1   :  { %v1000_v5 = vpop.eup %999 }
 0x1a2   :  { %v176_v9 = vmul.f32 %v1000_v5, %v1324_v21  ;;  %v997_v5 = vld [vmem:[#allocation11 + $0x30] sm:$0xff]  }
 0x1a4   :  { %v178_v10 = vmul.f32 %v176_v9, %v140_v7 }
 0x1a5   :  { %v1002_v11 = vpop.eup %1001 }
 0x1a6   :  { %v1004_v12 = vpop.eup %1003  ;;  %v135_v13 = vmul.f32 %v1002_v11, %v1326_v23  ;;  %v180_v20 = vadd.f32 %v178_v10, %v146_v14 }
 0x1a7   :  { %v177_v15 = vmul.f32 %v1004_v12, %v1332_v28 }
 0x1a8   :  { %v141_v19 = vmul.f32 %v140_v7, %v135_v13 }
 0x1a9   :  { %v1006_v16 = vpop.eup %1005  ;;  %v179_v17 = vmul.f32 %v177_v15, %v140_v7 }
 0x1aa   :  { %v136_v18 = vmul.f32 %v1006_v16, %v1334_v29  ;;  %v147_v26 = vadd.f32 %v146_v14, %v141_v19 }
 0x1ab   :  { %v181_v22 = vadd.f32 %v179_v17, %v146_v14 }
 0x1ac   :  { %v142_v24 = vmul.f32 %v140_v7, %v136_v18 }
 0x1ad   :  { %v182_v25 = vpack.c.bf16 %v181_v22, %v180_v20 }
 0x1ae   :  { %v148_v27 = vadd.f32 %v146_v14, %v142_v24 }
 0x1af   :  { %417 = vmatmul.mubr.bf16.vlgmr.msra.gmra.mrb[0].mxu1 %v182_v25 }
 0x1b0   :  { %v149_v21 = vpack.c.bf16 %v148_v27, %v147_v26  ;;  %905 = vmatprep.mubr.msk.f32.mxu1 %vm1191_vm1, %v1189_v8 }
 0x1b2   :  { %900 = vmatmul.mubr.bf16.vlgmr.msra.gmra.mrb[0].mxu0 %v149_v21 }
 0x1b3   :  { %941 = vmatprep.mubr.msk.bf16.mxu0 %vm1191_vm1, %v1189_v8  ;;  %926 = vmatpush3.bf16.msra.mxu0 %v991_v55 }
 0x1b4   :  { %927 = vmatprep.subr.bf16.mxu0 %v1189_v8 }
 0x1b7   :  { %928 = vmatpush3.bf16.msra.mxu0 %v992_v56 }
 0x1b8   :  { %929 = vmatprep.subr.bf16.mxu0 %v1189_v8 }
 0x1bb   :  { %930 = vmatpush3.bf16.msra.mxu0 %v993_v57 }
 0x1bc   :  { %931 = vmatprep.subr.bf16.mxu0 %v1189_v8 }
 0x1bf   :  { %932 = vmatpush3.bf16.msra.mxu0 %v994_v58 }
 0x1c0   :  { %933 = vmatprep.subr.bf16.mxu0 %v1189_v8 }
 0x1c3   :  { %934 = vmatpush3.bf16.msra.mxu0 %v995_v59 }
 0x1c4   :  { %935 = vmatprep.subr.bf16.mxu0 %v1189_v8 }
 0x1c7   :  { %936 = vmatpush3.bf16.msra.mxu0 %v996_v4 }
 0x1c8   :  { %937 = vmatprep.subr.bf16.mxu0 %v1189_v8 }
 0x1cb   :  { %938 = vmatpush3.bf16.msra.mxu0 %v997_v5 }
 0x1cc   :  { %939 = vmatprep.subr.bf16.mxu0 %v1189_v8 }
 0x1cf   :  { %940 = vmatpush3.bf16.msra.mxu0 %v998_v6 }
 0x282   :  { %v418_v23 = vpop.f32.mrb[0].mxu1 }
 0x283   :  { %v420_v28 = vpop.f32.mrb[1].mxu1  ;;  %904 = vmatpush3.xpose.msra.mxu1 %v418_v23 }
 0x284   :  { %v422_v29 = vpop.f32.mrb[2].mxu1  ;;  %908 = vmatprep.subr.mxu1 %v1189_v8  ;;  %v427_v32 = vpack.c.bf16 %v420_v28, %v420_v28 }
 0x285   :  { %v424_v30 = vpop.f32.mrb[3].mxu1  ;;  %v281_v31 = vpop.f32.mrb[0].mxu0 }
 0x286   :  { %v428_v33 = vpack.c.bf16 %v424_v30, %v424_v30  ;;  %v901_v34 = vpop.f32.mrb[1].mxu0  ;;  %906 = vmatmul.mubr.f32.vlgmr.msra.gmra.mrb[4].mxu1 %v281_v31  ;;  %v599_v38 = vsel %vm597_vm2, %v427_v32, 0 }
 0x287   :  { %909 = vmatpush3.xpose.msra.mxu1 %v422_v29  ;;  %v284_v35 = vpop.f32.mrb[2].mxu0  ;;  %910 = vmatprep.mubr.msk.f32.mxu1 %vm1191_vm1, %v1189_v8 }
 0x288   :  { %v645_v36 = vsel %vm597_vm2, %v428_v33, 0  ;;  %v902_v37 = vpop.f32.mrb[3].mxu0  ;;  %913 = vmatprep.subr.bf16.mxu1 %v1189_v8 }
 0x28a   :  { %911 = vmatmul.mubr.f32.vlgmr.msra.gmra.mrb[6].mxu1 %v284_v35 }
 0x28b   :  { %914 = vmatpush3.bf16.msra.mxu1 %v599_v38  ;;  %915 = vmatprep.mubr.msk.bf16.mxu1 %vm1191_vm1, %v1189_v8 }
 0x28c   :  { %919 = vmatprep.subr.bf16.mxu1 %v1189_v8 }
 0x359   :  { %v495_v39 = vpop.f32.mrb[4].mxu1 }
 0x35a   :  { %v907_v40 = vpop.f32.mrb[5].mxu1  ;;  %v570_v41 = vsel %vm569_vm3, %v495_v39, -inf }
 0x35b   :  { %571 = vmax.xlane.f32.xlu0 %v570_v41 }
 0x35d   :  { %v565_v42 = vpop.f32.mrb[6].mxu1 }
 0x35e   :  { %v912_v43 = vpop.f32.mrb[7].mxu1  ;;  %v573_v44 = vsel %vm569_vm3, %v565_v42, -inf }
 0x35f   :  { %574 = vmax.xlane.f32.xlu1 %v573_v44 }
 0x3e8   :  { %v572_v45 = vpop.xlane.xlu0 %571 }
 0x3e9   :  { %v576_v46 = vsub.f32 %v495_v39, %v572_v45 }
 0x3eb   :  { %v578_v47 = vmul.f32 1.442695, %v576_v46 }
 0x3ec   :  { %v575_v48 = vpop.xlane.xlu1 %574 }
 0x3ed   :  { %1007 = vpow2.f32 %v578_v47  ;;  %v577_v49 = vsub.f32 %v565_v42, %v575_v48 }
 0x3ef   :  { %v580_v50 = vmul.f32 1.442695, %v577_v49 }
 0x3f1   :  { %1009 = vpow2.f32 %v580_v50 }
 0x3f7   :  { %v1008_v51 = vpop.eup %1007 }
 0x3f8   :  { %v582_v52 = vsel %vm569_vm3, %v1008_v51, 0.0 }
 0x3f9   :  { %583 = vadd.xlane.f32.xlu0 %v582_v52 }
 0x3fb   :  { %v1010_v53 = vpop.eup %1009 }
 0x3fc   :  { %v585_v54 = vsel %vm569_vm3, %v1010_v53, 0.0 }
 0x3fd   :  { %586 = vadd.xlane.f32.xlu1 %v585_v54 }
 0x486   :  { %v584_v60 = vpop.xlane.xlu0 %583 }
 0x487   :  { %1011 = vrcp.f32 %v584_v60 }
 0x48a   :  { %v587_v61 = vpop.xlane.xlu1 %586 }
 0x48b   :  { %1013 = vrcp.f32 %v587_v61 }
 0x491   :  { %v1012_v62 = vpop.eup %1011 }
 0x492   :  { %v590_v63 = vmul.f32 %v1012_v62, %v1008_v51 }
 0x494   :  { %v592_v0 = vpack.c.bf16 %v590_v63, %v590_v63 }
 0x495   :  { %v1014_v1 = vpop.eup %1013 }
 0x496   :  { %916 = vmatmul.mubr.msk.bf16.vlgmr.msra.gmra.mrb[8].mxu1 %vm569_vm3, %v592_v0  ;;  %v591_v2 = vmul.f32 %v1014_v1, %v1010_v53 }
 0x497   :  { %920 = vmatpush3.bf16.msra.mxu1 %v645_v36  ;;  %921 = vmatprep.mubr.msk.bf16.mxu1 %vm1191_vm1, %v1189_v8 }
 0x498   :  { %v593_v3 = vpack.c.bf16 %v591_v2, %v591_v2 }
 0x49e   :  { %922 = vmatmul.mubr.msk.bf16.vlgmr.msra.gmra.mrb[12].mxu1 %vm569_vm3, %v593_v3 }
 0x569   :  { %v635_v7 = vpop.f32.mrb[8].mxu1 }
 0x56a   :  { %v917_v9 = vpop.f32.mrb[9].mxu1 }
 0x56b   :  { %v638_v11 = vpop.f32.mrb[10].mxu1 }
 0x56c   :  { %v918_v12 = vpop.f32.mrb[11].mxu1 }
 0x571   :  { %v681_v13 = vpop.f32.mrb[12].mxu1 }
 0x572   :  { %v687_v14 = vpack.c.bf16 %v681_v13, %v635_v7  ;;  %v923_v15 = vpop.f32.mrb[13].mxu1 }
 0x573   :  { %v684_v10 = vpop.f32.mrb[14].mxu1 }
 0x574   :  { %v924_v16 = vpop.f32.mrb[15].mxu1  ;;  %942 = vmatmul.mubr.bf16.vlgmr.msra.gmra.mrb[4].mxu0 %v687_v14 }
 0x647   :  { %v786_v17 = vpop.f32.mrb[4].mxu0 }
 0x648   :  { %793 = vst [vmem:[#allocation13] sm:$0xff] %v786_v17  ;;  %v943_v18 = vpop.f32.mrb[5].mxu0 }
 0x649   :  { %v789_v19 = vpop.f32.mrb[6].mxu0 }
 0x64a   :  { %794 = vst [vmem:[#allocation13 + $0x8] sm:$0xff] %v789_v19  ;;  %v944_v8 = vpop.f32.mrb[7].mxu0 }
 0x64b   :  { %1158 = shalt.err (!%p1155_p10)
}
 0x64c   :  { %s1159_s22 = scalar_lea.hbm %s1403_s6, 256 }
 0x64d   :  { %p1160_p11 = scmp.ne.s32.totalorder %s1403_s6, %s1159_s22  ;;  %p1163_p12 = scmp.lt.u32.totalorder %s1159_s22, %s1403_s6 }
 0x64f   :  { %p1165_p13 = pnand %p1163_p12, %p1160_p11 }
 0x651   :  { %1168 = shalt.err (!%p1165_p13)
}
 0x652   :  { %806 = dma.vmem_to_hbm [thread:$0]  %s801_s9, 256, %s1403_s6, [#allocation4], %s1186_s2, %s1186_s2, %s1187_s26  }
 0x653   :  { %1177 = dma.done.wait [#allocation4], 256  }
 0x654   :  { %1178 = vsyncadd [#allocation4], 4294967040 }
 0x655   :  { %810 = vsyncpa [#allocation3], 1 }
 0x656   :  { %811 = vsyncpa [#allocation6], 1 }
 0x657   :  { %812 = vsyncpa [#allocation9], 1 }
 0x658   :  { %813 = vsyncpa [#allocation12], 1 }
 0x659   :  { %814 = vsyncpa [#allocation4], 1 }

</bundles_post_ra>
